<compile_context>
chip_gen: v5e
topology: v5e:2x2
jax: 0.10.0
libtpu: 0.0.40
codegen_flags: <defaults>
</compile_context>

<pallas_src>
import jax
import jax.numpy as jnp
from jax.experimental import pallas as pl
from jax.experimental.pallas import tpu as pltpu

LANE = 128
_TARGET_BLOCK_BYTES = 2 * 1024 * 1024   # per (C, TILE_HW) block; x2 bufs x (in+out) ~ 8 MiB


def _round_up(x, m):
    return ((x + m - 1) // m) * m


def _pick_hw_tile(hw, c, itemsize):
    """Largest lane-dense (multiple-of-128) HW tile with a ~2 MiB (C, tile) block.

    Prefers tiles that divide HW exactly; otherwise pads HW up to a tile multiple.
    Returns (tile_hw, hw_padded).
    """
    max_lanes = max(LANE, (_TARGET_BLOCK_BYTES // max(1, c * itemsize)) // LANE * LANE)
    hw_ceil = _round_up(hw, LANE)
    max_lanes = min(max_lanes, hw_ceil)
    if hw % LANE == 0:
        t = max_lanes
        while t >= LANE:
            if hw % t == 0:
                return t, hw
            t -= LANE
        return LANE, hw
    tile = max_lanes
    return tile, _round_up(hw, tile)


# ---------------- pass 1: spatial pooling (sum, f32 accumulator) ----------------
def _pool_sum_kernel(x_ref, sum_ref):
    # x_ref:   (C, TILE_HW) — one spatial tile of one batch element (native dtype)
    # sum_ref: (C, 1) f32   — resident accumulator across the HW-tile axis
    t = pl.program_id(1)

    @pl.when(t == 0)
    def _():
        sum_ref[...] = jnp.zeros_like(sum_ref)

    # Accumulate in f32 without materializing an f32 copy of the whole tile.
    sum_ref[...] += jnp.sum(x_ref[...], axis=-1, keepdims=True, dtype=jnp.float32)


# ---------------- pass 2: streaming channel scale (native dtype) ----------------
def _scale_kernel(x_ref, gate_ref, o_ref):
    # x_ref: (C, TILE_HW), gate_ref: (C, 1) in x.dtype, o_ref: (C, TILE_HW)
    o_ref[...] = x_ref[...] * gate_ref[...]


def channel_operation(x_nchw, weight):
    """x_nchw: (N, C, H, W); weight: (C, C) from Conv2d(C, C, 1, bias=False)."""
    N, C, H, W = x_nchw.shape
    HW = H * W
    itemsize = jnp.dtype(x_nchw.dtype).itemsize
    tile_hw, hw_pad = _pick_hw_tile(HW, C, itemsize)
    n_hw = hw_pad // tile_hw

    x = x_nchw.reshape(N, C, HW)
    if hw_pad != HW:
        # Zero padding keeps the pooled sum exact; padded lanes are sliced off at the end.
        x = jnp.pad(x, ((0, 0), (0, 0), (0, hw_pad - HW)))

    # ---- pass 1: pooled sum over spatial tiles --------------------------------
    pool_cost = pl.CostEstimate(
        flops=N * C * hw_pad,
        transcendentals=0,
        bytes_accessed=N * C * hw_pad * itemsize + N * C * 4,
    )
    pooled_sum = pl.pallas_call(
        _pool_sum_kernel,
        out_shape=jax.ShapeDtypeStruct((N, C, 1), jnp.float32),
        grid_spec=pltpu.PrefetchScalarGridSpec(
            num_scalar_prefetch=0,
            grid=(N, n_hw),
            in_specs=[
                pl.BlockSpec((pl.Squeezed(), C, tile_hw), lambda n, t: (n, 0, t)),
            ],
            out_specs=pl.BlockSpec((pl.Squeezed(), C, 1), lambda n, t: (n, 0, 0)),
        ),
        compiler_params=pltpu.CompilerParams(
            dimension_semantics=("parallel", "arbitrary"),
            vmem_limit_bytes=32 * 1024 * 1024,
        ),
        cost_estimate=pool_cost,
    )(x)

    # ---- gate: tiny batched matmul + sigmoid, hoisted out of the grid ---------
    pooled = pooled_sum[:, :, 0] * (1.0 / jnp.float32(HW))          # (N, C) f32 mean
    gate = jax.nn.sigmoid(pooled @ weight.astype(jnp.float32).T)    # (N, C) f32
    gate = gate.astype(x.dtype)[:, :, None]                         # (N, C, 1) native dtype

    # ---- pass 2: streaming elementwise scale ----------------------------------
    scale_cost = pl.CostEstimate(
        flops=N * C * hw_pad,
        transcendentals=0,
        bytes_accessed=2 * N * C * hw_pad * itemsize + N * C * itemsize,
    )
    out = pl.pallas_call(
        _scale_kernel,
        out_shape=jax.ShapeDtypeStruct((N, C, hw_pad), x.dtype),
        grid_spec=pltpu.PrefetchScalarGridSpec(
            num_scalar_prefetch=0,
            grid=(N, n_hw),
            in_specs=[
                pl.BlockSpec((pl.Squeezed(), C, tile_hw), lambda n, t: (n, 0, t)),
                pl.BlockSpec((pl.Squeezed(), C, 1), lambda n, t: (n, 0, 0)),
            ],
            out_specs=pl.BlockSpec((pl.Squeezed(), C, tile_hw), lambda n, t: (n, 0, t)),
        ),
        compiler_params=pltpu.CompilerParams(
            dimension_semantics=("parallel", "parallel"),
            vmem_limit_bytes=32 * 1024 * 1024,
        ),
        cost_estimate=scale_cost,
    )(x, gate)

    if hw_pad != HW:
        out = out[:, :, :HW]
    return out.reshape(N, C, H, W)


if __name__ == "__main__":
    key = jax.random.PRNGKey(0)
    kx, kw = jax.random.split(key)

    N, C, H, W = 2, 4, 16, 16
    x = jax.random.normal(kx, (N, C, H, W), dtype=jnp.float32)
    # Conv2d(dim, dim, 1, bias=False) weight has shape (C, C, 1, 1); we keep (C, C).
    weight = jax.random.normal(kw, (C, C), dtype=jnp.float32) * 0.1

    out = jax.block_until_ready(channel_operation(x, weight))

    # Reference check in plain JAX (same math, no Pallas).
    pooled_ref = jnp.mean(x, axis=(2, 3))                  # (N, C)
    gate_ref = jax.nn.sigmoid(pooled_ref @ weight.T)       # (N, C)
    ref = x * gate_ref[:, :, None, None]
    assert jnp.allclose(out, ref, atol=1e-5, rtol=1e-5), "mismatch vs reference"

    print("KERNEL_OK")
</pallas_src>

<mosaic_0001>
module attributes {stable_mosaic.version = 11 : i64} {
  func.func @_pool_sum_kernel(%arg0: i32, %arg1: i32, %arg2: memref<1x4x256xf32, #tpu.memory_space<vmem>>, %arg3: memref<1x4x1xf32, #tpu.memory_space<vmem>>) attributes {dimension_semantics = [#tpu.dimension_semantics<parallel>, #tpu.dimension_semantics<arbitrary>], iteration_bounds = array<i64: 2, 1>, scalar_prefetch = 0 : i64, scratch_operands = 0 : i64, tpu.core_type = #tpu.core_type<tc>, window_params = [{transform_indices = @transform_0, window_bounds = array<i64: 1, 4, 256>}, {transform_indices = @transform_1, window_bounds = array<i64: 1, 4, 1>}]} {
    %c0_i32 = arith.constant 0 : i32
    %0 = arith.cmpi eq, %arg1, %c0_i32 : i32
    %1 = arith.extui %0 : i1 to i32
    %c0_i32_0 = arith.constant 0 : i32
    %2 = arith.cmpi ne, %1, %c0_i32_0 : i32
    scf.if %2 {
      %cst_9 = arith.constant 0.000000e+00 : f32
      %13 = vector.broadcast %cst_9 : f32 to vector<4x1xf32>
      %c0_10 = arith.constant 0 : index
      %c0_11 = arith.constant 0 : index
      %c0_12 = arith.constant 0 : index
      %14 = vector.load %arg3[%c0_10, %c0_11, %c0_12] : memref<1x4x1xf32, #tpu.memory_space<vmem>>, vector<1x4x1xf32>
      %15 = vector.shape_cast %14 : vector<1x4x1xf32> to vector<4x1xf32>
      %16 = vector.shape_cast %13 : vector<4x1xf32> to vector<1x4x1xf32>
      tpu.vector_store %arg3[%c0_10, %c0_11, %c0_12], %16 {strides = array<i32>} : memref<1x4x1xf32, #tpu.memory_space<vmem>>, vector<1x4x1xf32>,
    } else {
    }
    %c0 = arith.constant 0 : index
    %c0_1 = arith.constant 0 : index
    %c0_2 = arith.constant 0 : index
    %3 = vector.load %arg3[%c0, %c0_1, %c0_2] : memref<1x4x1xf32, #tpu.memory_space<vmem>>, vector<1x4x1xf32>
    %4 = vector.shape_cast %3 : vector<1x4x1xf32> to vector<4x1xf32>
    %c0_3 = arith.constant 0 : index
    %c0_4 = arith.constant 0 : index
    %c0_5 = arith.constant 0 : index
    %5 = vector.load %arg2[%c0_3, %c0_4, %c0_5] : memref<1x4x256xf32, #tpu.memory_space<vmem>>, vector<1x4x256xf32>
    %6 = vector.shape_cast %5 : vector<1x4x256xf32> to vector<4x256xf32>
    %cst = arith.constant dense<0.000000e+00> : vector<4xf32>
    %7 = vector.multi_reduction <add>, %6, %cst [1] : vector<4x256xf32> to vector<4xf32>
    %8 = vector.shape_cast %7 : vector<4xf32> to vector<4x1xf32>
    %9 = arith.addf %4, %8 : vector<4x1xf32>
    %c0_6 = arith.constant 0 : index
    %c0_7 = arith.constant 0 : index
    %c0_8 = arith.constant 0 : index
    %10 = vector.load %arg3[%c0_6, %c0_7, %c0_8] : memref<1x4x1xf32, #tpu.memory_space<vmem>>, vector<1x4x1xf32>
    %11 = vector.shape_cast %10 : vector<1x4x1xf32> to vector<4x1xf32>
    %12 = vector.shape_cast %9 : vector<4x1xf32> to vector<1x4x1xf32>
    tpu.vector_store %arg3[%c0_6, %c0_7, %c0_8], %12 {strides = array<i32>} : memref<1x4x1xf32, #tpu.memory_space<vmem>>, vector<1x4x1xf32>,
    return
  }
  func.func @transform_0(%arg0: i32, %arg1: i32) -> (i32, i32, i32) {
    %c0_i32 = arith.constant 0 : i32
    %c0_i32_0 = arith.constant 0 : i32
    return %arg0, %c0_i32, %arg1 : i32, i32, i32
  }
  func.func @transform_1(%arg0: i32, %arg1: i32) -> (i32, i32, i32) {
    %c0_i32 = arith.constant 0 : i32
    %c0_i32_0 = arith.constant 0 : i32
    %c0_i32_1 = arith.constant 0 : i32
    return %arg0, %c0_i32, %c0_i32_0 : i32, i32, i32
  }
}

</mosaic_0001>

<bundles_post_ra>
// kernel: tpu_custom_call.1
= control target key start
LH: loop header
LB: loop body
LE: loop exit
PB: predicated region body
PF: predicated region fallthrough
CT: control target
= control target key end

     0   :  { %6 = vsyncpa [#allocation3], 0  ;;  %s503_s0 = inlined_call_operand.hbm [shape: f32[2,4,256], index: 0, kind: input, shape index: {}]   ;;  %s504_s1 = inlined_call_operand.vmem [shape: f32[2,4,1], index: 1, kind: output, shape index: {}]  }
   0x1   :  { %8 = vsyncpa [#allocation3 + $0x1], 0  ;;  %s413_s6 = smov 0   ;;  %s415_s7 = smov 0  }
   0x2   :  { %s417_s8 = smov 0   ;;  %s419_s9 = smov 0  }
   0x3   :  { %s421_s10 = smov 0   ;;  %s423_s11 = smov 0  }
   0x4 LB: > { %s251_s12 = sadd.s32 4294967295, %s400_s11   ;;  %s26_s13 = sadd.s32 1, %s396_s10  ;;  %s400_s11 = sphi %s423_s11, %s14_s11   ;;  %s396_s10 = sphi %s421_s10, %s511_s10   ;;  %s392_s9 = sphi %s419_s9, %s510_s9   ;;  %s388_s8 = sphi %s417_s8, %s509_s8   ;;  %s384_s7 = sphi %s415_s7, %s508_s7   ;;  %s380_s6 = sphi %s413_s6, %s507_s6  }
   0x5   : > { %p28_p0 = scmp.ge.s32.totalorder %s26_s13, 2  ;;  %s35_s14 = sadd.s32 1, %s388_s8 }
   0x6   : > { %p42_p1 = scmp.ne.s32.totalorder %s388_s8, %s384_s7  ;;  %p43_p2 = scmp.eq.s32.totalorder %s400_s11, 0 }
   0x7   : > { %s513_s13 = smov (%p28_p0, %s26_s13), 0  ;;  %p48_p4 = scmp.ne.s32.totalorder %s384_s7, %s380_s6 }
   0x8   : > { %p449_p3 = por %p43_p2, %p42_p1  ;;  %s30_s16 = ssub.s32 %s396_s10, %s513_s13 }
   0x9   : > { %p49_p5 = scmp.eq.s32.totalorder %s251_s12, 0  ;;  %p33_p6 = scmp.eq.s32.totalorder %s30_s16, 0 }
   0xa   : > { %p270_p8 = scmp.lt.s32.totalorder %s400_s11, 2  ;;  %s98_s19 = sand.u32 1, %s388_s8  }
   0xb   : > { %p456_p7 = por %p49_p5, %p48_p4  ;;  %s263_s20 = sshll.u32 %s396_s10, 3 }
   0xc   : > { %s462_s18 = scalar_select %p33_p6, %s388_s8, %s35_s14  }
   0xd   : > { %s255_s21 = sshll.u32 %s98_s19, 3  ;;  %s109_s24 = scalar_lea.hbm %s503_s0, %s263_s20 }
   0xe   : > { %s111_s25 = sshll.u32 %s109_s24, 4  ;;  %s102_s26 = scalar_lea.vmem [#allocation2], %s255_s21  ;;  %s112_s25 = int_to_ptr.hbm [resolvable:$true] %s111_s25 }
   0xf   : > { %s113_s27 = sshll.u32 %s102_s26, 4  ;;  %p267_p9 = pnand %p270_p8, %p449_p3  ;;  %s114_s27 = int_to_ptr.vmem [resolvable:$true] %s113_s27 }
  0x10   : > { %p258_p10 = scmp.ge.s32.totalorder %s400_s11, 1  ;;  %p118_p11 = scmp.lt.s32.totalorder %s400_s11, 3 }
  0x11   : > { %s99_s28 = scalar_lea.sflag [#allocation3], %s98_s19 }
  0x12   : > { %269 = dma.hbm_to_vmem [thread:$0]  (!%p267_p9), %s112_s25, 128, %s114_s27, %s99_s28  }
  0x13   : > { %p119_p12 = pnand %p258_p10, %p118_p11 }
  0x14   : > { %s124_s29 = sand.u32 (!%p119_p12), 1, %s384_s7  }
  0x15   : > { %122 = sbr.rel (%p119_p12) target bundleno = 158 (0x9e), region = 24  ;;  %s259_s30 = sshll.u32 (!%p119_p12), %s124_s29, 3 }
  0x16   : > { %s125_s2 = scalar_lea.sflag (!%p119_p12), [#allocation3], %s124_s29  ;;  %s128_s3 = scalar_lea.vmem (!%p119_p12), [#allocation2], %s259_s30 }
  0x1a   : > { %375 = dma.done.wait (%p456_p7), %s125_s2, 128  }
  0x1b   : > { %377 = vsyncadd (%p456_p7), %s125_s2, 4294967168  ;;  %p148_p13 = scmp.lt.s32.totalorder %s392_s9, 1  ;;  %vm156_vm0 = vcmask 3072   ;;  %v402_v0 = vmov 0.0   ;;  %v159_v1 = vld [vmem:[%s128_s3] sm:$0xff]  ;;  %vm166_vm1 = vcmask 1043456  }
  0x1c   : > { %161 = vst [vmem:[#allocation1] ss:$2 sm:$0xff] %v159_v1 }
  0x1d   : > { %s515_s9 = smov (!%p148_p13, %s392_s9), 1 }
  0x1e   : > { %s260_s4 = sshll.u32 %s515_s9, 2 }
  0x1f   : > { %s151_s12 = scalar_lea.vmem %s504_s1, %s260_s4 }
  0x20   : > { %157 = vst.msk [vmem:[%s151_s12] sm:$0xf] %vm156_vm0, %v402_v0 }
  0x23   : > { %v162_v2 = vld.sshfl [vmem:[#allocation1] sm:$0xff pattern:$0x75316420]  ;;  %v163_v3 = vld.sshfl [vmem:[#allocation1 + $0x8] sm:$0xff pattern:$0x75316420] }
  0x24   : > { %v167_v4 = vsel %vm166_vm1, %v162_v2, 0.0  ;;  %v168_v5 = vsel %vm166_vm1, %v163_v3, 0.0 }
  0x25   : > { %v169_v6 = vadd.f32 %v168_v5, %v167_v4 }
  0x27   : > { %170 = vadd.xlane.f32.xlu0 %v169_v6  ;;  %v158_v7 = vld [vmem:[%s151_s12] sm:$0xf] }
  0x9a   : > { %v171_v8 = vpop.xlane.xlu0 %170 }
  0x9b   : > { %v172_v9 = vadd.f32 %v171_v8, %v158_v7 }
  0x9d   : > { %174 = vst.msk [vmem:[%s151_s12] sm:$0xf] %vm156_vm0, %v172_v9 }
  0x9e PF: > { %s14_s11 = sadd.s32 1, %s400_s11   ;;  %s507_s6 = smov %s384_s7 }
  0x9f   : > { %p11_p0 = scmp.ge.s32.totalorder %s14_s11, 4   ;;  %s508_s7 = smov %s388_s8 }
  0xa0   : > { %s509_s8 = smov %s462_s18  ;;  %s510_s9 = smov %s396_s10 }
  0xa1   : > { %s511_s10 = smov %s513_s13  ;;  %13 = sbr.rel (!%p11_p0) target bundleno = 4 (0x4), region = 68 }
  0xa6   :  { %194 = vsyncpa [#allocation3], 1 }
  0xa7   :  { %196 = vsyncpa [#allocation3 + $0x1], 1 }

</bundles_post_ra>
